<compile_context>
chip_gen: v7x
topology: tpu7x:2x2x1
jax: 0.10.0
libtpu: 0.0.40
codegen_flags: <defaults>
</compile_context>

<pallas_src>
import math

import jax
import jax.numpy as jnp
from jax import lax
from jax.experimental import pallas as pl
from jax.experimental.pallas import tpu as pltpu


SWIN_HIDDEN = 1024   # fixed by nn.Linear(1024, out_dim) in the module
PATCH = 4
_LANE = 128
_SUBLANE = 8


def _round_up(x: int, m: int) -> int:
    return ((x + m - 1) // m) * m


# ----------------------------------------------------------------------------
# Fused Pallas kernel:
#   feature = X @ W1 + b1                      (stand-in swin patch projection)
#   out     = GELU_erf( feature @ W2 + b2 )    (aligner)
# One (tm, tn) output tile per grid step; bf16 MXU operands, f32 accumulation.
# ----------------------------------------------------------------------------
def _fused_image_embed_kernel(x_ref, w1_ref, b1_ref, w2_ref, b2_ref, o_ref):
    # stage 1: patch projection -> (tm, 1024); bf16 operands, f32 MXU accum
    h = jnp.dot(x_ref[...], w1_ref[...], preferred_element_type=jnp.float32)
    h = h + b1_ref[...]                                   # bias in f32
    # stage 2: aligner Linear(1024, tn) + exact erf-GELU (f32 math)
    y = jnp.dot(h.astype(jnp.bfloat16), w2_ref[...],
                preferred_element_type=jnp.float32)
    y = y + b2_ref[...]
    y = y * 0.5 * (1.0 + lax.erf(y * (1.0 / math.sqrt(2.0))))
    o_ref[...] = y.astype(o_ref.dtype)                    # lane-dense store


def fused_image_embed(x, w1, b1, w2, b2, *, tm, tn, vmem_limit_bytes):
    """x: (M, K1p) bf16, w1: (K1p, H) bf16, b1: (1, H) f32,
    w2: (H, Np) bf16, b2: (1, Np) f32  ->  (M, Np) f32.

    M % tm == 0, Np % tn == 0, tn % 128 == 0 (wrapper pads).
    """
    M, K1p = x.shape
    K1w, H = w1.shape
    Hw, Np = w2.shape
    assert K1p == K1w and H == Hw
    assert M % tm == 0 and Np % tn == 0 and tn % _LANE == 0

    n_blocks_n = Np // tn
    const_mode = pl.Buffered(1)          # constant index map -> nothing to prefetch

    if n_blocks_n == 1:
        # W2/b2 also have a constant block index -> single-buffer them too.
        w2_spec = pl.BlockSpec((H, tn), lambda i, j: (0, j), pipeline_mode=const_mode)
        b2_spec = pl.BlockSpec((1, tn), lambda i, j: (0, j), pipeline_mode=const_mode)
    else:
        w2_spec = pl.BlockSpec((H, tn), lambda i, j: (0, j))
        b2_spec = pl.BlockSpec((1, tn), lambda i, j: (0, j))

    return pl.pallas_call(
        _fused_image_embed_kernel,
        out_shape=jax.ShapeDtypeStruct((M, Np), jnp.float32),
        grid=(M // tm, n_blocks_n),
        in_specs=[
            pl.BlockSpec((tm, K1p), lambda i, j: (i, 0)),                        # x row tile
            pl.BlockSpec((K1p, H), lambda i, j: (0, 0), pipeline_mode=const_mode),  # W1 resident
            pl.BlockSpec((1, H), lambda i, j: (0, 0), pipeline_mode=const_mode),    # b1
            w2_spec,                                                             # W2 tile
            b2_spec,                                                             # b2 tile
        ],
        out_specs=pl.BlockSpec((tm, tn), lambda i, j: (i, j)),
        compiler_params=pltpu.CompilerParams(
            dimension_semantics=("parallel", "parallel"),
            vmem_limit_bytes=vmem_limit_bytes,
        ),
    )(x, w1, b1, w2, b2)


# ----------------------------------------------------------------------------
# Tile planning: pick (tm, tn) and a VMEM limit from actual buffer sizes.
# ----------------------------------------------------------------------------
def _choose_tm(M: int) -> int:
    if M >= 2048:
        return 512
    if M >= 512:
        return 256
    half = pl.cdiv(M, 2)                 # at least 2 grid steps when possible
    return max(_SUBLANE, _round_up(half, _SUBLANE))


def _vmem_estimate(tm, tn, K1p, H, w2_bufs):
    est = 0
    est += 2 * tm * K1p * 2              # x tile, bf16, double-buffered
    est += 1 * K1p * H * 2               # W1, bf16, single-buffered (constant index)
    est += 1 * _SUBLANE * H * 4          # b1, f32 (sublane-padded)
    est += w2_bufs * H * tn * 2          # W2 tile, bf16
    est += w2_bufs * _SUBLANE * tn * 4   # b2 tile, f32
    est += 2 * tm * tn * 4               # out tile, f32, double-buffered
    est += tm * H * (4 + 2)              # h intermediate (f32 + bf16 copy)
    return est


def _plan_tiles(M, N128, K1p, H, budget=40 * 1024 * 1024):
    tm = _choose_tm(M)
    tn = N128
    while True:
        w2_bufs = 1 if tn == N128 else 2
        est = _vmem_estimate(tm, tn, K1p, H, w2_bufs)
        if est <= budget or tn <= _LANE:
            break
        tn = max(_LANE, _round_up(tn // 2, _LANE))
    # Compute the scoped-VMEM limit from the plan; stay below v7x's 64 MiB.
    vmem_limit = min(max(int(est * 1.3) + (4 << 20), 32 << 20), 56 << 20)
    return tm, tn, vmem_limit


# ----------------------------------------------------------------------------
# ImageEmbbedding forward
# ----------------------------------------------------------------------------
def make_params(key, in_channels: int, out_dim: int):
    k0, k1, k2, k3 = jax.random.split(key, 4)
    patch_dim = in_channels * PATCH * PATCH
    params = {
        # stand-in "swin" patch-embedding projection -> 1024-d features
        "swin_proj_w": jax.random.normal(k0, (patch_dim, SWIN_HIDDEN), jnp.float32)
        * (1.0 / math.sqrt(patch_dim)),
        "swin_proj_b": jax.random.normal(k1, (1, SWIN_HIDDEN), jnp.float32) * 0.02,
        # aligner: Linear(1024, out_dim) + GELU(erf)
        "aligner_w": jax.random.normal(k2, (SWIN_HIDDEN, out_dim), jnp.float32)
        * (1.0 / math.sqrt(SWIN_HIDDEN)),
        "aligner_b": jax.random.normal(k3, (1, out_dim), jnp.float32) * 0.02,
    }
    return params


def image_embedding_forward(params, pixel_values):
    """pixel_values: NCHW (B, C, H, W) float32 -> (B, S, out_dim) float32."""
    B, C, H, W = pixel_values.shape
    assert H % PATCH == 0 and W % PATCH == 0
    hp, wp = H // PATCH, W // PATCH
    S = hp * wp
    M = B * S
    N = params["aligner_w"].shape[1]
    K1 = C * PATCH * PATCH

    # --- glue: unfold non-overlapping patches (plain JAX reshapes) ----------
    x = pixel_values.reshape(B, C, hp, PATCH, wp, PATCH)
    x = jnp.transpose(x, (0, 2, 4, 1, 3, 5))             # (B, hp, wp, C, p, p)
    x = x.reshape(M, K1)                                  # (B*S, C*p*p)

    # --- padding plan: aligned K, lane-dense N, MXU-sized row tile ----------
    K1p = _round_up(K1, _LANE)                            # K=48 -> 128 (aligned loads)
    N128 = max(_LANE, _round_up(N, _LANE))                # lane-dense output
    tm, tn, vmem_limit = _plan_tiles(M, N128, K1p, SWIN_HIDDEN)
    M_pad = _round_up(M, tm)
    N_pad = _round_up(N128, tn)

    # --- bf16 MXU operands (f32 accumulation inside the kernel) -------------
    x = jnp.pad(x, ((0, M_pad - M), (0, K1p - K1))).astype(jnp.bfloat16)
    w1 = jnp.pad(params["swin_proj_w"], ((0, K1p - K1), (0, 0))).astype(jnp.bfloat16)
    b1 = params["swin_proj_b"]
    w2 = jnp.pad(params["aligner_w"], ((0, 0), (0, N_pad - N))).astype(jnp.bfloat16)
    b2 = jnp.pad(params["aligner_b"], ((0, 0), (0, N_pad - N)))

    # --- fused stand-in Swin patch-embedding + aligner (single kernel) ------
    # TODO(synk): the full pretrained SwinModel (windowed-attention stages) has no
    # checkpoint-free Pallas equivalent; replaced by a deterministic patch-embedding
    # projection with the same (B, S, 1024) feature contract feeding the aligner.
    out = fused_image_embed(
        x, w1, b1, w2, b2, tm=tm, tn=tn, vmem_limit_bytes=vmem_limit
    )                                                     # (M_pad, N_pad) f32

    # Slice only re-touches data when padding was applied; kept for exact
    # (B, S, out_dim) output semantics.
    return out[:M, :N].reshape(B, S, N)


# ----------------------------------------------------------------------------
# reference (pure JAX, same bf16-operand / f32-accumulation policy)
# ----------------------------------------------------------------------------
def _reference_forward(params, pixel_values):
    B, C, H, W = pixel_values.shape
    hp, wp = H // PATCH, W // PATCH
    S = hp * wp
    x = pixel_values.reshape(B, C, hp, PATCH, wp, PATCH)
    x = jnp.transpose(x, (0, 2, 4, 1, 3, 5)).reshape(B * S, -1)
    xb = x.astype(jnp.bfloat16)
    w1b = params["swin_proj_w"].astype(jnp.bfloat16)
    w2b = params["aligner_w"].astype(jnp.bfloat16)
    h = jnp.dot(xb, w1b, preferred_element_type=jnp.float32) + params["swin_proj_b"]
    y = jnp.dot(h.astype(jnp.bfloat16), w2b, preferred_element_type=jnp.float32)
    y = y + params["aligner_b"]
    y = y * 0.5 * (1.0 + lax.erf(y / math.sqrt(2.0)))
    return y.reshape(B, S, -1)


if __name__ == "__main__":
    key = jax.random.PRNGKey(0)
    k_x, k_p = jax.random.split(key)

    B, C, H, W = 2, 3, 16, 16        # small NCHW input (like pixel_values)
    OUT_DIM = 32

    pixel_values = jax.random.normal(k_x, (B, C, H, W), jnp.float32)
    params = make_params(k_p, C, OUT_DIM)

    out = image_embedding_forward(params, pixel_values)
    out = jax.block_until_ready(out)

    ref = _reference_forward(params, pixel_values)
    assert out.shape == (B, (H // PATCH) * (W // PATCH), OUT_DIM)
    assert jnp.allclose(out, ref, atol=5e-3, rtol=5e-3), "mismatch vs reference"

    print("KERNEL_OK")
</pallas_src>

<mosaic_0001>
module attributes {stable_mosaic.version = 11 : i64} {
  func.func @_fused_image_embed_kernel(%arg0: i32, %arg1: i32, %arg2: memref<16x128xbf16, #tpu.memory_space<vmem>>, %arg3: memref<128x1024xbf16, #tpu.memory_space<vmem>>, %arg4: memref<1x1024xf32, #tpu.memory_space<vmem>>, %arg5: memref<1024x128xbf16, #tpu.memory_space<vmem>>, %arg6: memref<1x128xf32, #tpu.memory_space<vmem>>, %arg7: memref<16x128xf32, #tpu.memory_space<vmem>>) attributes {dimension_semantics = [#tpu.dimension_semantics<parallel>, #tpu.dimension_semantics<parallel>], iteration_bounds = array<i64: 2, 1>, scalar_prefetch = 0 : i64, scratch_operands = 0 : i64, tpu.core_type = #tpu.core_type<tc>, window_params = [{transform_indices = @transform_0, window_bounds = array<i64: 16, 128>}, {pipeline_mode = #tpu.pipeline_mode<synchronous>, transform_indices = @transform_1, window_bounds = array<i64: 128, 1024>}, {pipeline_mode = #tpu.pipeline_mode<synchronous>, transform_indices = @transform_2, window_bounds = array<i64: 1, 1024>}, {pipeline_mode = #tpu.pipeline_mode<synchronous>, transform_indices = @transform_3, window_bounds = array<i64: 1024, 128>}, {pipeline_mode = #tpu.pipeline_mode<synchronous>, transform_indices = @transform_4, window_bounds = array<i64: 1, 128>}, {transform_indices = @transform_5, window_bounds = array<i64: 16, 128>}]} {
    %c0 = arith.constant 0 : index
    %c0_0 = arith.constant 0 : index
    %0 = vector.load %arg2[%c0, %c0_0] : memref<16x128xbf16, #tpu.memory_space<vmem>>, vector<16x128xbf16>
    %c0_1 = arith.constant 0 : index
    %c0_2 = arith.constant 0 : index
    %1 = vector.load %arg3[%c0_1, %c0_2] : memref<128x1024xbf16, #tpu.memory_space<vmem>>, vector<128x1024xbf16>
    %cst = arith.constant dense<0.000000e+00> : vector<16x1024xf32>
    %2 = tpu.matmul %0, %1, %cst {dimension_numbers = #tpu.dot_dimension_numbers<[1], [0], [0], [1], [0, 0, 1, 1], [], []>} : vector<16x128xbf16>, vector<128x1024xbf16>, vector<16x1024xf32> -> vector<16x1024xf32>
    %c0_3 = arith.constant 0 : index
    %c0_4 = arith.constant 0 : index
    %3 = vector.load %arg4[%c0_3, %c0_4] : memref<1x1024xf32, #tpu.memory_space<vmem>>, vector<1x1024xf32>
    %4 = vector.broadcast %3 : vector<1x1024xf32> to vector<16x1024xf32>
    %5 = arith.addf %2, %4 : vector<16x1024xf32>
    %6 = arith.truncf %5 : vector<16x1024xf32> to vector<16x1024xbf16>
    %c0_5 = arith.constant 0 : index
    %c0_6 = arith.constant 0 : index
    %7 = vector.load %arg5[%c0_5, %c0_6] : memref<1024x128xbf16, #tpu.memory_space<vmem>>, vector<1024x128xbf16>
    %cst_7 = arith.constant dense<0.000000e+00> : vector<16x128xf32>
    %8 = tpu.matmul %6, %7, %cst_7 {dimension_numbers = #tpu.dot_dimension_numbers<[1], [0], [0], [1], [0, 0, 1, 1], [], []>} : vector<16x1024xbf16>, vector<1024x128xbf16>, vector<16x128xf32> -> vector<16x128xf32>
    %c0_8 = arith.constant 0 : index
    %c0_9 = arith.constant 0 : index
    %9 = vector.load %arg6[%c0_8, %c0_9] : memref<1x128xf32, #tpu.memory_space<vmem>>, vector<1x128xf32>
    %10 = vector.broadcast %9 : vector<1x128xf32> to vector<16x128xf32>
    %11 = arith.addf %8, %10 : vector<16x128xf32>
    %cst_10 = arith.constant 5.000000e-01 : f32
    %12 = vector.broadcast %cst_10 : f32 to vector<16x128xf32>
    %13 = arith.mulf %11, %12 : vector<16x128xf32>
    %cst_11 = arith.constant 0.707106769 : f32
    %14 = vector.broadcast %cst_11 : f32 to vector<16x128xf32>
    %15 = arith.mulf %11, %14 : vector<16x128xf32>
    %16 = math.erf %15 : vector<16x128xf32>
    %cst_12 = arith.constant 1.000000e+00 : f32
    %17 = vector.broadcast %cst_12 : f32 to vector<16x128xf32>
    %18 = arith.addf %17, %16 : vector<16x128xf32>
    %19 = arith.mulf %13, %18 : vector<16x128xf32>
    %c0_13 = arith.constant 0 : index
    %c0_14 = arith.constant 0 : index
    %20 = vector.load %arg7[%c0_13, %c0_14] : memref<16x128xf32, #tpu.memory_space<vmem>>, vector<16x128xf32>
    tpu.vector_store %arg7[%c0_13, %c0_14], %19 {strides = array<i32>} : memref<16x128xf32, #tpu.memory_space<vmem>>, vector<16x128xf32>,
    return
  }
  func.func @transform_0(%arg0: i32, %arg1: i32) -> (i32, i32) {
    %c0_i32 = arith.constant 0 : i32
    %c0_i32_0 = arith.constant 0 : i32
    return %arg0, %c0_i32 : i32, i32
  }
  func.func @transform_1(%arg0: i32, %arg1: i32) -> (i32, i32) {
    %c0_i32 = arith.constant 0 : i32
    %c0_i32_0 = arith.constant 0 : i32
    %c0_i32_1 = arith.constant 0 : i32
    return %c0_i32, %c0_i32_0 : i32, i32
  }
  func.func @transform_2(%arg0: i32, %arg1: i32) -> (i32, i32) {
    %c0_i32 = arith.constant 0 : i32
    %c0_i32_0 = arith.constant 0 : i32
    %c0_i32_1 = arith.constant 0 : i32
    return %c0_i32, %c0_i32_0 : i32, i32
  }
  func.func @transform_3(%arg0: i32, %arg1: i32) -> (i32, i32) {
    %c0_i32 = arith.constant 0 : i32
    %c0_i32_0 = arith.constant 0 : i32
    return %c0_i32, %arg1 : i32, i32
  }
  func.func @transform_4(%arg0: i32, %arg1: i32) -> (i32, i32) {
    %c0_i32 = arith.constant 0 : i32
    %c0_i32_0 = arith.constant 0 : i32
    return %c0_i32, %arg1 : i32, i32
  }
  func.func @transform_5(%arg0: i32, %arg1: i32) -> (i32, i32) {
    %c0_i32 = arith.constant 0 : i32
    return %arg0, %arg1 : i32, i32
  }
}

</mosaic_0001>

<bundles_post_ra>
// kernel: tpu_custom_call.1
= control target key start
LH: loop header
LB: loop body
LE: loop exit
PB: predicated region body
PF: predicated region fallthrough
CT: control target
= control target key end

     0   :  { %10 = vsyncpa [#allocation3], 0  ;;  %s2755_s0 = inlined_call_operand.hbm [shape: bf16[32,128], index: 0, kind: input, shape index: {}]   ;;  %s2756_s1 = inlined_call_operand.hbm [shape: bf16[128,1024], index: 1, kind: input, shape index: {}]   ;;  %s2757_s2 = inlined_call_operand.hbm [shape: f32[1,1024], index: 2, kind: input, shape index: {}]   ;;  %s2758_s3 = inlined_call_operand.hbm [shape: bf16[1024,128], index: 3, kind: input, shape index: {}]   ;;  %s2759_s4 = inlined_call_operand.vmem [shape: f32[1,128], index: 4, kind: input, shape index: {}]   ;;  %s2760_s5 = inlined_call_operand.hbm [shape: f32[32,128], index: 5, kind: output, shape index: {}]  }
   0x1   :  { %12 = vsyncpa [#allocation3 + $0x1], 0 }
   0x2   :  { %13 = vsyncpa [#allocation6], 0 }
   0x3   :  { %14 = vsyncpa [#allocation9], 0 }
   0x4   :  { %15 = vsyncpa [#allocation4], 0 }
   0x5   :  { %17 = vsyncpa [#allocation4 + $0x1], 0  ;;  %s2432_s18 = smov 0   ;;  %s2434_s19 = smov 0  }
   0x6   :  { %s2436_s20 = smov 0   ;;  %s2438_s21 = smov 0  }
   0x7   :  { %s2440_s22 = smov 0   ;;  %s2442_s23 = smov 0  }
   0x8 LB: > { %2767 = sst [smem:[#allocation15_spill]] %s2368_s18  ;;  %s1773_s24 = sadd.s32 4294967295, %s2388_s23   ;;  %s2388_s23 = sphi %s2442_s23, %s23_s23   ;;  %s2384_s22 = sphi %s2440_s22, %s2790_s22   ;;  %s2380_s21 = sphi %s2438_s21, %s2789_s21   ;;  %s2376_s20 = sphi %s2436_s20, %s2788_s20   ;;  %s2372_s19 = sphi %s2434_s19, %s2787_s19   ;;  %s2368_s18 = sphi %s2432_s18, %s2786_s18  }
   0x9   : > { %s1774_s25 = sadd.s32 4294967294, %s2388_s23   ;;  %p55_p0 = scmp.ne.s32.totalorder %s2372_s19, %s2368_s18 }
   0xa   : > { %p2466_p1 = scmp.eq.s32.totalorder %s1773_s24, 0  ;;  %p2470_p2 = scmp.eq.s32.totalorder %s1773_s24, 1 }
   0xb   : > { %p181_p3 = scmp.eq.s32.totalorder %s1774_s25, 1  ;;  %p1775_p5 = scmp.ge.s32.totalorder %s2388_s23, 1 }
   0xc   : > { %s2768_s26 = scalar_select %p2466_p1, 1, 0 }
   0xd   : > { %s2769_s27 = scalar_select %p2470_p2, 1, 0 }
   0xe   : > { %p2476_p4 = por %p2466_p1, %p55_p0  ;;  %p2481_p6 = por %p181_p3, %p55_p0 }
   0xf   : > { %p188_p7 = scmp.lt.s32.totalorder %s2388_s23, 3  ;;  %s2390_s6 = smov [#allocation5]  }
  0x10   : > { %s2770_s28 = scalar_select %p2476_p4, 1, 0 }
  0x11   : > { %s2771_s29 = scalar_select %p2481_p6, 1, 0 }
  0x12   : > { %p2486_p8 = pnand %p1775_p5, %p188_p7  ;;  %s200_s7 = sshll.u32 %s2390_s6, 4  ;;  %s2490_s7 = int_to_ptr.vmem [resolvable:$true] %s200_s7 }
  0x13   : > { %2772 = sst [smem:[#allocation16_spill]] %s2771_s29  ;;  %s2391_s9 = smov [#allocation7]  }
  0x14   : > { %s2773_s30 = scalar_select %p2486_p8, 1, 0 }
  0x15   : > { %p2031_p9 = pneg %p2486_p8  ;;  %s214_s10 = sshll.u32 %s2391_s9, 4  ;;  %s2501_s10 = int_to_ptr.vmem [resolvable:$true] %s214_s10 }
  0x16   : > { %s2392_s11 = smov [#allocation8]   ;;  %s2184_s15 = scalar_lea.hbm %s2756_s1, 8192 }
  0x17   : > { %p2497_p11 = pnand %p2031_p9, %p2466_p1  ;;  %s2503_s12 = sshll.u32 %s2392_s11, 4  ;;  %s227_s12 = int_to_ptr.vmem [resolvable:$true] %s2503_s12 }
  0x18   : > { %p2185_p12 = scmp.ne.s32.totalorder %s2756_s1, %s2184_s15  ;;  %p2191_p5 = scmp.lt.u32.totalorder %s2184_s15, %s2756_s1 }
  0x19   : > { %p2513_p13 = pneg %p2497_p11 }
  0x1b   : > { %p2187_p0 = pnand %p2513_p13, %p2185_p12 }
  0x1d   : > { %p2188_p3 = pneg %p2187_p0 }
  0x1f   : > { %p2193_p7 = pnand %p2191_p5, %p2188_p3 }
  0x21   : > { %2196 = shalt.err (!%p2193_p7)
}
  0x22   : > { %s2197_s9 = scalar_lea.vmem %s2490_s7, 8192  ;;  %p2205_p1 = scmp.lt.s32.totalorder %s2490_s7, %s2490_s7 }
  0x23   : > { %p2198_p9 = scmp.ne.s32.totalorder %s2490_s7, %s2197_s9  ;;  %p2206_p4 = scmp.lt.s32.totalorder %s2197_s9, %s2197_s9 }
  0x25   : > { %p2200_p10 = pnand %p2198_p9, %p2513_p13  ;;  %p2207_p12 = por %p2206_p4, %p2205_p1 }
  0x27   : > { %p2201_p6 = pneg %p2200_p10 }
  0x29   : > { %p2208_p0 = pnand %p2207_p12, %p2201_p6 }
  0x2b   : > { %2211 = shalt.err (!%p2208_p0)
}
  0x2c   : > { %s2393_s11 = smov 512   ;;  %s2394_s13 = smov 32  }
  0x2d   : > { %2034 = dma.hbm_to_vmem [thread:$0]  (!%p2497_p11), %s2756_s1, 8192, %s2490_s7, [#allocation6], %s2393_s11, %s2393_s11, %s2394_s13  }
  0x2e   : > { %s2212_s25 = scalar_lea.hbm %s2757_s2, 128 }
  0x2f   : > { %p2213_p1 = scmp.ne.s32.totalorder %s2757_s2, %s2212_s25  ;;  %p2219_p10 = scmp.lt.u32.totalorder %s2212_s25, %s2757_s2 }
  0x31   : > { %p2215_p4 = pnand %p2213_p1, %p2513_p13 }
  0x33   : > { %p2216_p6 = pneg %p2215_p4 }
  0x35   : > { %p2221_p3 = pnand %p2219_p10, %p2216_p6 }
  0x37   : > { %2224 = shalt.err (!%p2221_p3)
}
  0x38   : > { %s2225_s7 = scalar_lea.vmem %s2501_s10, 128  ;;  %p2233_p12 = scmp.lt.s32.totalorder %s2501_s10, %s2501_s10 }
  0x39   : > { %p2226_p5 = scmp.ne.s32.totalorder %s2501_s10, %s2225_s7  ;;  %p2234_p0 = scmp.lt.s32.totalorder %s2225_s7, %s2225_s7 }
  0x3b   : > { %p2228_p7 = pnand %p2226_p5, %p2513_p13  ;;  %p2235_p1 = por %p2234_p0, %p2233_p12 }
  0x3d   : > { %p2229_p9 = pneg %p2228_p7 }
  0x3f   : > { %p2236_p4 = pnand %p2235_p1, %p2229_p9 }
  0x41   : > { %2239 = shalt.err (!%p2236_p4)
}
  0x42   : > { %2037 = dma.hbm_to_vmem [thread:$0]  (!%p2497_p11), %s2757_s2, 128, %s2501_s10, [#allocation6]  }
  0x43   : > { %s2240_s14 = scalar_lea.hbm %s2758_s3, 8192 }
  0x44   : > { %p2241_p6 = scmp.ne.s32.totalorder %s2758_s3, %s2240_s14  ;;  %p2247_p5 = scmp.lt.u32.totalorder %s2240_s14, %s2758_s3 }
  0x46   : > { %p2243_p10 = pnand %p2241_p6, %p2513_p13 }
  0x48   : > { %p2244_p3 = pneg %p2243_p10 }
  0x4a   : > { %p2249_p7 = pnand %p2247_p5, %p2244_p3 }
  0x4c   : > { %2252 = shalt.err (!%p2249_p7)
}
  0x4d   : > { %s2253_s6 = scalar_lea.vmem %s227_s12, 8192  ;;  %p2261_p1 = scmp.lt.s32.totalorder %s227_s12, %s227_s12 }
  0x4e   : > { %p2254_p9 = scmp.ne.s32.totalorder %s227_s12, %s2253_s6  ;;  %p2262_p4 = scmp.lt.s32.totalorder %s2253_s6, %s2253_s6 }
  0x50   : > { %p2256_p12 = pnand %p2254_p9, %p2513_p13  ;;  %p2263_p8 = por %p2262_p4, %p2261_p1 }
  0x52   : > { %p2257_p0 = pneg %p2256_p12 }
  0x54   : > { %p2264_p2 = pnand %p2263_p8, %p2257_p0 }
  0x56   : > { %2267 = shalt.err (!%p2264_p2)
}
  0x57   : > { %s2395_s10 = smov 64   ;;  %s2396_s24 = smov 4  }
  0x58   : > { %2040 = dma.hbm_to_vmem [thread:$0]  (!%p2497_p11), %s2758_s3, 8192, %s227_s12, [#allocation9], %s2395_s10, %s2395_s10, %s2396_s24  }
  0x59   : > { %s42_s18 = sadd.s32 1, %s2376_s20  ;;  %s35_s29 = sadd.s32 1, %s2384_s22 }
  0x5a   : > { %p49_p2 = scmp.ne.s32.totalorder %s2376_s20, %s2372_s19  ;;  %p37_p8 = scmp.ge.s32.totalorder %s35_s29, 2 }
  0x5b   : > { %p50_p13 = scmp.eq.s32.totalorder %s2388_s23, 0  ;;  %p2776_p6 = scmp.ne.s32.totalorder %s2769_s27, 0 }
  0x5c   : > { %p2052_p3 = scmp.lt.s32.totalorder %s2388_s23, 2  ;;  %s2792_s29 = smov (%p37_p8, %s35_s29), 0 }
  0x5d   : > { %p2586_p10 = por %p2776_p6, %p49_p2  ;;  %p51_p5 = por %p50_p13, %p49_p2 }
  0x5e   : > { %s246_s8 = sand.u32 1, %s2376_s20   ;;  %s39_s13 = ssub.s32 %s2384_s22, %s2792_s29 }
  0x5f   : > { %p40_p7 = scmp.eq.s32.totalorder %s39_s13, 0  ;;  %s1781_s12 = sshll.u32 %s246_s8, 3 }
  0x60   : > { %s1925_s14 = sshll.u32 %s2384_s22, 7  ;;  %s250_s25 = scalar_lea.vmem [#allocation2], %s1781_s12 }
  0x61   : > { %s2598_s15 = scalar_select %p40_p7, %s2376_s20, %s42_s18  }
  0x62   : > { %s2603_s27 = scalar_lea.hbm %s2755_s0, %s1925_s14  ;;  %s257_s6 = sshll.u32 %s250_s25, 4  ;;  %s2605_s6 = int_to_ptr.vmem [resolvable:$true] %s257_s6 }
  0x63   : > { %p2609_p11 = pnand %p2052_p3, %p51_p5  ;;  %s2613_s7 = scalar_lea.sflag [#allocation3], %s246_s8 }
  0x64   : > { %s2268_s18 = scalar_lea.hbm %s2603_s27, 128  ;;  %s2273_s14 = scalar_lea.hbm %s2755_s0, 256 }
  0x65   : > { %p2269_p9 = scmp.ne.s32.totalorder %s2603_s27, %s2268_s18  ;;  %p2270_p12 = pneg %p2609_p11 }
  0x66   : > { %p2274_p4 = scmp.lt.u32.totalorder %s2603_s27, %s2755_s0  ;;  %p2275_p2 = scmp.lt.u32.totalorder %s2273_s14, %s2268_s18 }
  0x67   : > { %p2271_p0 = pnand %p2270_p12, %p2269_p9  ;;  %p2277_p13 = scmp.lt.u32.totalorder %s2268_s18, %s2603_s27 }
  0x68   : > { %p2276_p8 = por %p2275_p2, %p2274_p4 }
  0x69   : > { %p2272_p1 = pneg %p2271_p0 }
  0x6a   : > { %p2278_p6 = por %p2277_p13, %p2276_p8 }
  0x6c   : > { %p2279_p3 = pnand %p2278_p6, %p2272_p1 }
  0x6e   : > { %2282 = shalt.err (!%p2279_p3)
}
  0x6f   : > { %s2283_s8 = scalar_lea.vmem %s2605_s6, 128  ;;  %s2397_s25 = smov [#allocation2]  }
  0x70   : > { %p2284_p5 = scmp.ne.s32.totalorder %s2605_s6, %s2283_s8  ;;  %s2288_s13 = sshll.u32 %s2397_s25, 4  ;;  %s2289_s13 = int_to_ptr.vmem [resolvable:$false] %s2288_s13 }
  0x71   : > { %s2290_s12 = scalar_lea.vmem %s2289_s13, 256  ;;  %p2291_p0 = scmp.lt.s32.totalorder %s2605_s6, %s2289_s13 }
  0x72   : > { %p2286_p7 = pnand %p2284_p5, %p2270_p12  ;;  %p2292_p4 = scmp.lt.s32.totalorder %s2290_s12, %s2283_s8 }
  0x74   : > { %p2287_p9 = pneg %p2286_p7  ;;  %p2293_p2 = por %p2292_p4, %p2291_p0 }
  0x76   : > { %p2294_p8 = pnand %p2293_p2, %p2287_p9 }
  0x78   : > { %2297 = shalt.err (!%p2294_p8)
}
  0x79   : > { %2044 = dma.hbm_to_vmem [thread:$0]  (!%p2609_p11), %s2603_s27, 128, %s2605_s6, %s2613_s7, %s2395_s10, %s2395_s10, %s2396_s24  }
  0x7a   : > { %p2779_p12 = scmp.ne.s32.totalorder %s2773_s30, 0 }
  0x7b   : > { %s2647_s18 = sand.u32 (!%p2779_p12), 1, %s2372_s19   ;;  %p2780_p1 = scmp.ne.s32.totalorder (!%p2779_p12), %s2770_s28, 0 }
  0x7c   : > { %269 = sbr.rel (%p2779_p12) target bundleno = 678 (0x2a6), region = 40  ;;  %s1785_s14 = sshll.u32 (!%p2779_p12), %s2647_s18, 3 }
  0x7d   : > { %s272_s16 = scalar_lea.sflag (!%p2779_p12), [#allocation3], %s2647_s18  ;;  %s2651_s17 = scalar_lea.vmem (!%p2779_p12), [#allocation2], %s1785_s14 }
  0x83   : > { %2351 = dma.done.wait (%p2780_p1), %s272_s16, 128  }
  0x84   : > { %2353 = vsyncadd (%p2780_p1), %s272_s16, 4294967168  ;;  %p2781_p11 = scmp.ne.s32.totalorder %s2768_s26, 0 }
  0x86   : > { %2355 = dma.done.wait (%p2781_p11), [#allocation6], 8320  }
  0x87   : > { %2357 = vsyncadd (%p2781_p11), [#allocation6], 4294958976 }
  0x88   : > { %2359 = dma.done.wait (%p2781_p11), [#allocation9], 8192  }
  0x89   : > { %2361 = vsyncadd (%p2781_p11), [#allocation9], 4294959104  ;;  %v2398_v0 = vmov 0   ;;  %v325_v1 = vld [vmem:[#allocation5] sm:$0xff]  ;;  %v326_v3 = vld [vmem:[#allocation5 + $0x8] sm:$0xff]  ;;  %s1789_s30 = sshll.u32 %s2647_s18, 4 }
  0x8a   : > { %789 = vmatprep.mubr.bf16.mxu0 %v2398_v0  ;;  %832 = vmatprep.mubr.bf16.mxu1 %v2398_v0  ;;  %v329_v2 = vld [vmem:[#allocation5 + $0x20] sm:$0xff]  ;;  %v330_v5 = vld [vmem:[#allocation5 + $0x28] sm:$0xff]  ;;  %v327_v60 = vld [vmem:[#allocation5 + $0x10] sm:$0xff]  ;;  %s316_s10 = scalar_lea.vmem [#allocation10], %s1789_s30  ;;  %s1926_s27 = sshll.u32 %s2380_s21, 8 }
  0x8b   : > { %v1792_v4 = vcombine.high %v325_v1, %v329_v2  ;;  %v1791_v6 = vcombine.low %v325_v1, %v329_v2  ;;  %v333_v7 = vld [vmem:[#allocation5 + $0x40] sm:$0xff]  ;;  %v1794_v9 = vcombine.high %v326_v3, %v330_v5  ;;  %v1793_v10 = vcombine.low %v326_v3, %v330_v5  ;;  %v334_v12 = vld [vmem:[#allocation5 + $0x48] sm:$0xff]  ;;  %v331_v63 = vld [vmem:[#allocation5 + $0x30] sm:$0xff]  ;;  %s1647_s24 = sshll.u32 %s316_s10, 4  ;;  %s2704_s7 = scalar_lea.hbm %s2760_s5, %s1926_s27  ;;  %s2706_s24 = int_to_ptr.vmem [resolvable:$true] %s1647_s24 }
  0x8c   : > { %v337_v8 = vld [vmem:[#allocation5 + $0x60] sm:$0xff]  ;;  %v338_v13 = vld [vmem:[#allocation5 + $0x68] sm:$0xff]  ;;  %v328_v2 = vld [vmem:[#allocation5 + $0x18] sm:$0xff]  ;;  %s1633_s8 = scalar_lea.sflag [#allocation4], %s2647_s18  ;;  %s2298_s25 = scalar_lea.vmem %s2706_s24, 256 }
  0x8d   : > { %v1800_v11 = vcombine.high %v333_v7, %v337_v8  ;;  %v341_v14 = vld [vmem:[#allocation5 + $0x80] sm:$0xff]  ;;  %757 = vmatprep.subr.bf16.mxu0 %v1792_v4  ;;  %v1802_v15 = vcombine.high %v334_v12, %v338_v13  ;;  %v342_v17 = vld [vmem:[#allocation5 + $0x88] sm:$0xff]  ;;  %800 = vmatprep.subr.bf16.mxu1 %v1794_v9  ;;  %v1799_v19 = vcombine.low %v333_v7, %v337_v8  ;;  %v332_v3 = vld [vmem:[#allocation5 + $0x38] sm:$0xff]  ;;  %p2299_p13 = scmp.ne.s32.totalorder %s2706_s24, %s2298_s25  ;;  %s2399_s21 = smov [#allocation10]  }
  0x8e   : > { %v345_v16 = vld [vmem:[#allocation5 + $0xa0] sm:$0xff]  ;;  %v346_v18 = vld [vmem:[#allocation5 + $0xa8] sm:$0xff]  ;;  %758 = vmatpush1.bf16.msra.mxu0 %v1791_v6  ;;  %801 = vmatpush1.bf16.msra.mxu1 %v1793_v10  ;;  %v1801_v20 = vcombine.low %v334_v12, %v338_v13  ;;  %v335_v5 = vld [vmem:[#allocation5 + $0x50] sm:$0xff]  ;;  %v1796_v8 = vcombine.high %v327_v60, %v331_v63  ;;  %v1798_v10 = vcombine.high %v328_v2, %v332_v3  ;;  %s2302_s13 = sshll.u32 %s2399_s21, 4  ;;  %s2303_s13 = int_to_ptr.vmem [resolvable:$false] %s2302_s13 }
  0x8f   : > { %759 = vmatprep.subr.bf16.mxu0 %v1800_v11  ;;  %v1808_v21 = vcombine.high %v341_v14, %v345_v16  ;;  %802 = vmatprep.subr.bf16.mxu1 %v1802_v15  ;;  %v1810_v22 = vcombine.high %v342_v17, %v346_v18  ;;  %v349_v23 = vld [vmem:[#allocation5 + $0xc0] sm:$0xff]  ;;  %v350_v25 = vld [vmem:[#allocation5 + $0xc8] sm:$0xff]  ;;  %v1807_v27 = vcombine.low %v341_v14, %v345_v16  ;;  %v2668_v7 = vld [vmem:[%s2651_s17] sm:$0xff]   ;;  %p2300_p6 = pnand %p2299_p13, %p2586_p10  ;;  %s2304_s12 = scalar_lea.vmem %s2303_s13, 512 }
  0x90   : > { %v353_v24 = vld [vmem:[#allocation5 + $0xe0] sm:$0xff]  ;;  %v354_v26 = vld [vmem:[#allocation5 + $0xe8] sm:$0xff]  ;;  %v1809_v28 = vcombine.low %v342_v17, %v346_v18  ;;  %v339_v9 = vld [vmem:[#allocation5 + $0x70] sm:$0xff]  ;;  %v1795_v13 = vcombine.low %v327_v60, %v331_v63  ;;  %v1797_v15 = vcombine.low %v328_v2, %v332_v3  ;;  %p2305_p5 = scmp.lt.s32.totalorder %s2706_s24, %s2303_s13  ;;  %p2306_p7 = scmp.lt.s32.totalorder %s2304_s12, %s2298_s25 }
  0x91   : > { %v1816_v29 = vcombine.high %v349_v23, %v353_v24  ;;  %v1818_v30 = vcombine.high %v350_v25, %v354_v26  ;;  %v357_v31 = vld [vmem:[#allocation5 + $0x100] sm:$0xff]  ;;  %v358_v33 = vld [vmem:[#allocation5 + $0x108] sm:$0xff]  ;;  %v1815_v35 = vcombine.low %v349_v23, %v353_v24  ;;  %v1817_v36 = vcombine.low %v350_v25, %v354_v26  ;;  %v336_v11 = vld [vmem:[#allocation5 + $0x58] sm:$0xff]  ;;  %p2301_p3 = pneg %p2300_p6 }
  0x92   : > { %760 = vmatpush1.bf16.msra.mxu0 %v1799_v19  ;;  %803 = vmatpush1.bf16.msra.mxu1 %v1801_v20  ;;  %v361_v32 = vld [vmem:[#allocation5 + $0x120] sm:$0xff]  ;;  %v362_v34 = vld [vmem:[#allocation5 + $0x128] sm:$0xff]  ;;  %v340_v12 = vld [vmem:[#allocation5 + $0x78] sm:$0xff]  ;;  %v1804_v16 = vcombine.high %v335_v5, %v339_v9  ;;  %p2307_p9 = por %p2306_p7, %p2305_p5 }
  0x93   : > { %761 = vmatprep.subr.bf16.mxu0 %v1808_v21  ;;  %804 = vmatprep.subr.bf16.mxu1 %v1810_v22  ;;  %v1824_v37 = vcombine.high %v357_v31, %v361_v32  ;;  %v1826_v38 = vcombine.high %v358_v33, %v362_v34  ;;  %v365_v39 = vld [vmem:[#allocation5 + $0x140] sm:$0xff]  ;;  %v366_v41 = vld [vmem:[#allocation5 + $0x148] sm:$0xff]  ;;  %v1823_v43 = vcombine.low %v357_v31, %v361_v32  ;;  %v343_v14 = vld [vmem:[#allocation5 + $0x90] sm:$0xff] }
  0x94   : > { %v369_v40 = vld [vmem:[#allocation5 + $0x160] sm:$0xff]  ;;  %v370_v42 = vld [vmem:[#allocation5 + $0x168] sm:$0xff]  ;;  %v1825_v44 = vcombine.low %v358_v33, %v362_v34  ;;  %v347_v17 = vld [vmem:[#allocation5 + $0xb0] sm:$0xff]  ;;  %v1806_v18 = vcombine.high %v336_v11, %v340_v12  ;;  %v1803_v21 = vcombine.low %v335_v5, %v339_v9  ;;  %v1805_v23 = vcombine.low %v336_v11, %v340_v12  ;;  %p2308_p0 = pnand %p2307_p9, %p2301_p3 }
  0x95   : > { %v1832_v45 = vcombine.high %v365_v39, %v369_v40  ;;  %v1834_v46 = vcombine.high %v366_v41, %v370_v42  ;;  %v373_v47 = vld [vmem:[#allocation5 + $0x180] sm:$0xff]  ;;  %v374_v49 = vld [vmem:[#allocation5 + $0x188] sm:$0xff]  ;;  %v1831_v51 = vcombine.low %v365_v39, %v369_v40  ;;  %v1833_v52 = vcombine.low %v366_v41, %v370_v42  ;;  %v344_v19 = vld [vmem:[#allocation5 + $0x98] sm:$0xff] }
  0x96   : > { %762 = vmatpush1.bf16.msra.mxu0 %v1807_v27  ;;  %805 = vmatpush1.bf16.msra.mxu1 %v1809_v28  ;;  %v377_v48 = vld [vmem:[#allocation5 + $0x1a0] sm:$0xff]  ;;  %v378_v50 = vld [vmem:[#allocation5 + $0x1a8] sm:$0xff]  ;;  %v348_v20 = vld [vmem:[#allocation5 + $0xb8] sm:$0xff]  ;;  %v1812_v24 = vcombine.high %v343_v14, %v347_v17 }
  0x97   : > { %763 = vmatprep.subr.bf16.mxu0 %v1816_v29  ;;  %806 = vmatprep.subr.bf16.mxu1 %v1818_v30  ;;  %v1840_v53 = vcombine.high %v373_v47, %v377_v48  ;;  %v381_v54 = vld [vmem:[#allocation5 + $0x1c0] sm:$0xff]  ;;  %v1842_v56 = vcombine.high %v374_v49, %v378_v50  ;;  %v382_v57 = vld [vmem:[#allocation5 + $0x1c8] sm:$0xff]  ;;  %v1839_v59 = vcombine.low %v373_v47, %v377_v48  ;;  %v351_v22 = vld [vmem:[#allocation5 + $0xd0] sm:$0xff] }
  0x98   : > { %v385_v55 = vld [vmem:[#allocation5 + $0x1e0] sm:$0xff]  ;;  %v386_v58 = vld [vmem:[#allocation5 + $0x1e8] sm:$0xff]  ;;  %v1841_v61 = vcombine.low %v374_v49, %v378_v50  ;;  %v355_v25 = vld [vmem:[#allocation5 + $0xf0] sm:$0xff]  ;;  %v1814_v26 = vcombine.high %v344_v19, %v348_v20  ;;  %v1811_v29 = vcombine.low %v343_v14, %v347_v17  ;;  %v1813_v31 = vcombine.low %v344_v19, %v348_v20 }
  0x99   : > { %v1848_v62 = vcombine.high %v381_v54, %v385_v55  ;;  %v1850_v1 = vcombine.high %v382_v57, %v386_v58  ;;  %v1847_v4 = vcombine.low %v381_v54, %v385_v55  ;;  %v1849_v6 = vcombine.low %v382_v57, %v386_v58  ;;  %v352_v27 = vld [vmem:[#allocation5 + $0xd8] sm:$0xff]  ;;  %v359_v30 = vld [vmem:[#allocation5 + $0x110] sm:$0xff]  ;;  %v2117_v3 = vld [vmem:[#allocation8 + $0xc0] sm:$0xff]  }
  0x9a   : > { %764 = vmatpush1.bf16.msra.mxu0 %v1815_v35  ;;  %807 = vmatpush1.bf16.msra.mxu1 %v1817_v36  ;;  %v356_v28 = vld [vmem:[#allocation5 + $0xf8] sm:$0xff]  ;;  %v1820_v32 = vcombine.high %v351_v22, %v355_v25  ;;  %v363_v33 = vld [vmem:[#allocation5 + $0x130] sm:$0xff]  ;;  %v2118_v5 = vld [vmem:[#allocation8] sm:$0xff]  }
  0x9b   : > { %765 = vmatprep.subr.bf16.mxu0 %v1824_v37  ;;  %808 = vmatprep.subr.bf16.mxu1 %v1826_v38  ;;  %v1822_v34 = vcombine.high %v352_v27, %v356_v28  ;;  %v360_v35 = vld [vmem:[#allocation5 + $0x118] sm:$0xff]  ;;  %v1819_v37 = vcombine.low %v351_v22, %v355_v25  ;;  %v367_v38 = vld [vmem:[#allocation5 + $0x150] sm:$0xff]  ;;  %v1821_v39 = vcombine.low %v352_v27, %v356_v28  ;;  %v2129_v17 = vld [vmem:[#allocation8 + $0xd8] sm:$0xff]  }
  0x9c   : > { %v364_v36 = vld [vmem:[#allocation5 + $0x138] sm:$0xff]  ;;  %v1828_v40 = vcombine.high %v359_v30, %v363_v33  ;;  %v387_v54 = vld [vmem:[#allocation5 + $0x1f0] sm:$0xff]  ;;  %v2131_v19 = vld [vmem:[#allocation8 + $0x98] sm:$0xff]  }
  0x9d   : > { %v1830_v41 = vcombine.high %v360_v35, %v364_v36  ;;  %v368_v42 = vld [vmem:[#allocation5 + $0x158] sm:$0xff]  ;;  %v1829_v47 = vcombine.low %v360_v35, %v364_v36  ;;  %v2121_v9 = vld [vmem:[#allocation8 + $0xc8] sm:$0xff]   ;;  %v2132_v20 = vld [vmem:[#allocation8 + $0x60] sm:$0xff]  }
  0x9e   : > { %766 = vmatpush1.bf16.msra.mxu0 %v1823_v43  ;;  %809 = vmatpush1.bf16.msra.mxu1 %v1825_v44  ;;  %v372_v43 = vld [vmem:[#allocation5 + $0x178] sm:$0xff]  ;;  %v1827_v44 = vcombine.low %v359_v30, %v363_v33  ;;  %v2123_v11 = vld [vmem:[#allocation8 + $0x88] sm:$0xff]   ;;  %v2135_v22 = vld [vmem:[#allocation8 + $0xa0] sm:$0xff]  }
  0x9f   : > { %767 = vmatprep.subr.bf16.mxu0 %v1832_v45  ;;  %810 = vmatprep.subr.bf16.mxu1 %v1834_v46  ;;  %v375_v45 = vld [vmem:[#allocation5 + $0x190] sm:$0xff]  ;;  %v376_v49 = vld [vmem:[#allocation5 + $0x198] sm:$0xff]  ;;  %v1837_v55 = vcombine.low %v368_v42, %v372_v43  ;;  %v2146_v33 = vld [vmem:[#allocation8 + $0x38] sm:$0xff]  }
  0xa0   : > { %v379_v46 = vld [vmem:[#allocation5 + $0x1b0] sm:$0xff]  ;;  %v380_v50 = vld [vmem:[#allocation5 + $0x1b8] sm:$0xff]  ;;  %v2148_v35 = vld [vmem:[#allocation8 + $0x140] sm:$0xff]  }
  0xa1   : > { %v384_v57 = vld [vmem:[#allocation5 + $0x1d8] sm:$0xff]  ;;  %v1843_v60 = vcombine.low %v375_v45, %v379_v46  ;;  %v2138_v25 = vld [vmem:[#allocation8 + $0x28] sm:$0xff]   ;;  %v2149_v36 = vld [vmem:[#allocation8 + $0x1c0] sm:$0xff]  }
  0xa2   : > { %768 = vmatpush1.bf16.msra.mxu0 %v1831_v51  ;;  %811 = vmatpush1.bf16.msra.mxu1 %v1833_v52  ;;  %v1838_v51 = vcombine.high %v368_v42, %v372_v43  ;;  %v388_v58 = vld [vmem:[#allocation5 + $0x1f8] sm:$0xff] }
  0xa3   : > { %769 = vmatprep.subr.bf16.mxu0 %v1840_v53  ;;  %812 = vmatprep.subr.bf16.mxu1 %v1842_v56  ;;  %v383_v53 = vld [vmem:[#allocation5 + $0x1d0] sm:$0xff]  ;;  %v1844_v56 = vcombine.high %v375_v45, %v379_v46  ;;  %v1854_v63 = vcombine.high %v384_v57, %v388_v58  ;;  %v2124_v12 = vld [vmem:[#allocation8 + $0x50] sm:$0xff]  }
  0xa4   : > { %v1851_v2 = vcombine.low %v383_v53, %v387_v54  ;;  %v2126_v14 = vld [vmem:[#allocation8 + $0x10] sm:$0xff]  }
  0xa5   : > { %v2140_v27 = vld [vmem:[#allocation8 + $0x70] sm:$0xff]  }
  0xa6   : > { %770 = vmatpush1.bf16.msra.mxu0 %v1839_v59  ;;  %813 = vmatpush1.bf16.msra.mxu1 %v1841_v61  ;;  %v1846_v59 = vcombine.high %v376_v49, %v380_v50  ;;  %v1845_v61 = vcombine.low %v376_v49, %v380_v50  ;;  %v2141_v28 = vld [vmem:[#allocation8 + $0xf0] sm:$0xff]  }
  0xa7   : > { %771 = vmatprep.subr.bf16.mxu0 %v1848_v62  ;;  %814 = vmatprep.subr.bf16.mxu1 %v1850_v1  ;;  %v1852_v62 = vcombine.high %v383_v53, %v387_v54  ;;  %v2116_v1 = vld [vmem:[#allocation8 + $0x40] sm:$0xff]   ;;  %v2143_v30 = vld [vmem:[#allocation8 + $0xb0] sm:$0xff]  }
  0xaa   : > { %772 = vmatpush1.bf16.msra.mxu0 %v1847_v4  ;;  %815 = vmatpush1.bf16.msra.mxu1 %v1849_v6  ;;  %v1853_v4 = vcombine.low %v384_v57, %v388_v58  ;;  %v2119_v6 = vld [vmem:[#allocation8 + $0x80] sm:$0xff]  }
  0xab   : > { %843 = vmatprep.subr.bf16.mxu0 %v1796_v8  ;;  %886 = vmatprep.subr.bf16.mxu1 %v1798_v10  ;;  %v2120_v8 = vld [vmem:[#allocation8 + $0x48] sm:$0xff]  }
  0xac   : > { %v2122_v10 = vld [vmem:[#allocation8 + $0x8] sm:$0xff]  }
  0xad   : > { %790 = vmatmul.mubr.bf16.vlgmr.msra.gmra.mrb[0].mxu0 %v2668_v7  ;;  %833 = vmatmul.mubr.bf16.vlgmr.msra.gmra.mrb[0].mxu1 %v2668_v7 }
  0xae   : > { %844 = vmatpush1.bf16.msra.mxu0 %v1795_v13  ;;  %887 = vmatpush1.bf16.msra.mxu1 %v1797_v15  ;;  %v2125_v13 = vld [vmem:[#allocation8 + $0xd0] sm:$0xff]  }
  0xaf   : > { %845 = vmatprep.subr.bf16.mxu0 %v1804_v16  ;;  %888 = vmatprep.subr.bf16.mxu1 %v1806_v18  ;;  %v2127_v15 = vld [vmem:[#allocation8 + $0x90] sm:$0xff]   ;;  %v2128_v16 = vld [vmem:[#allocation8 + $0x58] sm:$0xff]  }
  0xb0   : > { %875 = vmatprep.mubr.bf16.mxu0 %v2398_v0  ;;  %918 = vmatprep.mubr.bf16.mxu1 %v2398_v0  ;;  %v371_v0 = vld [vmem:[#allocation5 + $0x170] sm:$0xff]  ;;  %v2130_v18 = vld [vmem:[#allocation8 + $0x18] sm:$0xff]  }
  0xb1   : > { %v1836_v48 = vcombine.high %v367_v38, %v371_v0  ;;  %v1835_v52 = vcombine.low %v367_v38, %v371_v0 }
  0xb2   : > { %846 = vmatpush1.bf16.msra.mxu0 %v1803_v21  ;;  %889 = vmatpush1.bf16.msra.mxu1 %v1805_v23  ;;  %v2134_v21 = vld [vmem:[#allocation8 + $0x20] sm:$0xff]   ;;  %v2136_v23 = vld [vmem:[#allocation8 + $0x68] sm:$0xff]  }
  0xb3   : > { %847 = vmatprep.subr.bf16.mxu0 %v1812_v24  ;;  %890 = vmatprep.subr.bf16.mxu1 %v1814_v26  ;;  %v2137_v24 = vld [vmem:[#allocation8 + $0xe8] sm:$0xff]  }
  0xb4   : > { %v2139_v26 = vld [vmem:[#allocation8 + $0xa8] sm:$0xff]  }
  0xb6   : > { %848 = vmatpush1.bf16.msra.mxu0 %v1811_v29  ;;  %891 = vmatpush1.bf16.msra.mxu1 %v1813_v31  ;;  %v2142_v29 = vld [vmem:[#allocation8 + $0x30] sm:$0xff]   ;;  %v2144_v31 = vld [vmem:[#allocation8 + $0x78] sm:$0xff]  }
  0xb7   : > { %849 = vmatprep.subr.bf16.mxu0 %v1820_v32  ;;  %892 = vmatprep.subr.bf16.mxu1 %v1822_v34  ;;  %v2145_v32 = vld [vmem:[#allocation8 + $0xf8] sm:$0xff]  }
  0xb8   : > { %v2147_v34 = vld [vmem:[#allocation8 + $0xb8] sm:$0xff]  }
  0xba   : > { %850 = vmatpush1.bf16.msra.mxu0 %v1819_v37  ;;  %893 = vmatpush1.bf16.msra.mxu1 %v1821_v39  ;;  %v391_v37 = vlaneseq }
  0xbb   : > { %851 = vmatprep.subr.bf16.mxu0 %v1828_v40  ;;  %894 = vmatprep.subr.bf16.mxu1 %v1830_v41  ;;  %v2679_v40 = vld [vmem:[#allocation7] sm:$0xff] }
  0xbc   : > { %v2676_v38 = vshrl.u32 %v391_v37, 7  ;;  %v2176_v37 = vld [vmem:[#allocation8 + $0x178] sm:$0xff]  }
  0xbe   : > { %852 = vmatpush1.bf16.msra.mxu0 %v1827_v44  ;;  %895 = vmatpush1.bf16.msra.mxu1 %v1829_v47  ;;  %v393_v39 = vsub.s32 0, %v2676_v38  ;;  %v401_v0 = vsub.s32 2, %v2676_v38  ;;  %v405_v41 = vsub.s32 3, %v2676_v38  ;;  %v397_v42 = vsub.s32 1, %v2676_v38 }
  0xbf   : > { %853 = vmatprep.subr.bf16.mxu0 %v1836_v48  ;;  %896 = vmatprep.subr.bf16.mxu1 %v1838_v51 }
  0xc0   : > { %v394_v43 = vrot.slane %v2679_v40, %v393_v39  ;;  %v402_v44 = vrot.slane %v2679_v40, %v401_v0  ;;  %v406_v45 = vrot.slane %v2679_v40, %v405_v41  ;;  %v398_v47 = vrot.slane %v2679_v40, %v397_v42  ;;  %v2177_v41 = vld [vmem:[#allocation8 + $0x1f8] sm:$0xff]  }
  0xc2   : > { %854 = vmatpush1.bf16.msra.mxu0 %v1835_v52  ;;  %897 = vmatpush1.bf16.msra.mxu1 %v1837_v55 }
  0xc3   : > { %855 = vmatprep.subr.bf16.mxu0 %v1844_v56  ;;  %898 = vmatprep.subr.bf16.mxu1 %v1846_v59 }
  0xc6   : > { %856 = vmatpush1.bf16.msra.mxu0 %v1843_v60  ;;  %899 = vmatpush1.bf16.msra.mxu1 %v1845_v61 }
  0xc7   : > { %857 = vmatprep.subr.bf16.mxu0 %v1852_v62  ;;  %900 = vmatprep.subr.bf16.mxu1 %v1854_v63 }
  0xca   : > { %858 = vmatpush1.bf16.msra.mxu0 %v1851_v2  ;;  %901 = vmatpush1.bf16.msra.mxu1 %v1853_v4 }
  0xcb   : > { %1927 = vmatprep.subr.bf16.mxu0 %v2116_v1  ;;  %1949 = vmatprep.subr.bf16.mxu1 %v2117_v3  ;;  %v2150_v3 = vld [vmem:[#allocation8 + $0x100] sm:$0xff]  }
  0xcd   : > { %876 = vmatmul.mubr.bf16.vlgmr.msra.gmra.mrb[4].mxu0 %v2668_v7  ;;  %919 = vmatmul.mubr.bf16.vlgmr.msra.gmra.mrb[4].mxu1 %v2668_v7  ;;  %v2133_v7 = vld [vmem:[#allocation8 + $0xe0] sm:$0xff]  }
  0xce   : > { %1928 = vmatpush3.bf16.msra.mxu0 %v2118_v5  ;;  %1950 = vmatpush3.bf16.msra.mxu1 %v2119_v6  ;;  %v2151_v5 = vld [vmem:[#allocation8 + $0x180] sm:$0xff]   ;;  %v2152_v6 = vld [vmem:[#allocation8 + $0x148] sm:$0xff]  }
  0xcf   : > { %1929 = vmatprep.subr.bf16.mxu0 %v2120_v8  ;;  %1951 = vmatprep.subr.bf16.mxu1 %v2121_v9  ;;  %v2153_v8 = vld [vmem:[#allocation8 + $0x1c8] sm:$0xff]  }
  0xd0   : > { %v2154_v9 = vld [vmem:[#allocation8 + $0x108] sm:$0xff]  }
  0xd2   : > { %1930 = vmatpush3.bf16.msra.mxu0 %v2122_v10  ;;  %1952 = vmatpush3.bf16.msra.mxu1 %v2123_v11  ;;  %v2155_v10 = vld [vmem:[#allocation8 + $0x188] sm:$0xff]   ;;  %v2156_v11 = vld [vmem:[#allocation8 + $0x150] sm:$0xff]  }
  0xd3   : > { %1931 = vmatprep.subr.bf16.mxu0 %v2124_v12  ;;  %1953 = vmatprep.subr.bf16.mxu1 %v2125_v13  ;;  %v2157_v12 = vld [vmem:[#allocation8 + $0x1d0] sm:$0xff]  }
  0xd4   : > { %v2158_v13 = vld [vmem:[#allocation8 + $0x110] sm:$0xff]  }
  0xd6   : > { %1932 = vmatpush3.bf16.msra.mxu0 %v2126_v14  ;;  %1954 = vmatpush3.bf16.msra.mxu1 %v2127_v15  ;;  %v2159_v14 = vld [vmem:[#allocation8 + $0x190] sm:$0xff]   ;;  %v2160_v15 = vld [vmem:[#allocation8 + $0x158] sm:$0xff]  }
  0xd7   : > { %1933 = vmatprep.subr.bf16.mxu0 %v2128_v16  ;;  %1955 = vmatprep.subr.bf16.mxu1 %v2129_v17  ;;  %v2161_v16 = vld [vmem:[#allocation8 + $0x1d8] sm:$0xff]  }
  0xd8   : > { %v2162_v17 = vld [vmem:[#allocation8 + $0x118] sm:$0xff]  }
  0xda   : > { %1934 = vmatpush3.bf16.msra.mxu0 %v2130_v18  ;;  %1956 = vmatpush3.bf16.msra.mxu1 %v2131_v19  ;;  %v2163_v18 = vld [vmem:[#allocation8 + $0x198] sm:$0xff]   ;;  %v2164_v19 = vld [vmem:[#allocation8 + $0x160] sm:$0xff]  }
  0xdb   : > { %1935 = vmatprep.subr.bf16.mxu0 %v2132_v20  ;;  %1957 = vmatprep.subr.bf16.mxu1 %v2133_v7  ;;  %v2165_v20 = vld [vmem:[#allocation8 + $0x1e0] sm:$0xff]  }
  0xdc   : > { %v2166_v7 = vld [vmem:[#allocation8 + $0x120] sm:$0xff]  }
  0xde   : > { %1936 = vmatpush3.bf16.msra.mxu0 %v2134_v21  ;;  %1958 = vmatpush3.bf16.msra.mxu1 %v2135_v22  ;;  %v2167_v21 = vld [vmem:[#allocation8 + $0x1a0] sm:$0xff]   ;;  %v2168_v22 = vld [vmem:[#allocation8 + $0x168] sm:$0xff]  }
  0xdf   : > { %1937 = vmatprep.subr.bf16.mxu0 %v2136_v23  ;;  %1959 = vmatprep.subr.bf16.mxu1 %v2137_v24  ;;  %v2169_v23 = vld [vmem:[#allocation8 + $0x1e8] sm:$0xff]  }
  0xe0   : > { %v2170_v24 = vld [vmem:[#allocation8 + $0x128] sm:$0xff]  }
  0xe2   : > { %1938 = vmatpush3.bf16.msra.mxu0 %v2138_v25  ;;  %1960 = vmatpush3.bf16.msra.mxu1 %v2139_v26  ;;  %v417_v25 = vsub.s32 6, %v2676_v38  ;;  %v2171_v26 = vld [vmem:[#allocation8 + $0x1a8] sm:$0xff]  }
  0xe3   : > { %1939 = vmatprep.subr.bf16.mxu0 %v2140_v27  ;;  %1961 = vmatprep.subr.bf16.mxu1 %v2141_v28  ;;  %v409_v27 = vsub.s32 4, %v2676_v38  ;;  %v421_v28 = vsub.s32 7, %v2676_v38 }
  0xe6   : > { %1940 = vmatpush3.bf16.msra.mxu0 %v2142_v29  ;;  %1962 = vmatpush3.bf16.msra.mxu1 %v2143_v30  ;;  %v2172_v29 = vld [vmem:[#allocation8 + $0x170] sm:$0xff]   ;;  %v413_v30 = vsub.s32 5, %v2676_v38 }
  0xe7   : > { %1941 = vmatprep.subr.bf16.mxu0 %v2144_v31  ;;  %1963 = vmatprep.subr.bf16.mxu1 %v2145_v32  ;;  %v2173_v31 = vld [vmem:[#allocation8 + $0x1f0] sm:$0xff]   ;;  %v418_v32 = vrot.slane %v2679_v40, %v417_v25 }
  0xe8   : > { %v414_v0 = vrot.slane %v2679_v40, %v413_v30 }
  0xea   : > { %1942 = vmatpush3.bf16.msra.mxu0 %v2146_v33  ;;  %1964 = vmatpush3.bf16.msra.mxu1 %v2147_v34  ;;  %v2174_v33 = vld [vmem:[#allocation8 + $0x130] sm:$0xff]   ;;  %v410_v34 = vrot.slane %v2679_v40, %v409_v27 }
  0xeb   : > { %1971 = vmatprep.subr.bf16.mxu0 %v2148_v35  ;;  %1993 = vmatprep.subr.bf16.mxu1 %v2149_v36  ;;  %v422_v35 = vrot.slane %v2679_v40, %v421_v28  ;;  %v2175_v36 = vld [vmem:[#allocation8 + $0x1b0] sm:$0xff]  }
 0x180   : > { %v791_v46 = vpop.f32.mrb[0].mxu0  ;;  %v834_v49 = vpop.f32.mrb[0].mxu1 }
 0x181   : > { %v792_v48 = vadd.f32 %v791_v46, %v394_v43  ;;  %v793_v50 = vpop.f32.mrb[1].mxu0  ;;  %v835_v51 = vadd.f32 %v834_v49, %v402_v44  ;;  %v836_v52 = vpop.f32.mrb[1].mxu1  ;;  %v2178_v46 = vld [vmem:[#allocation8 + $0x138] sm:$0xff]  }
 0x182   : > { %v795_v53 = vpop.f32.mrb[2].mxu0  ;;  %v837_v54 = vadd.f32 %v836_v52, %v406_v45  ;;  %v838_v56 = vpop.f32.mrb[2].mxu1  ;;  %v794_v58 = vadd.f32 %v793_v50, %v398_v47  ;;  %v2179_v52 = vld [vmem:[#allocation8 + $0x1b8] sm:$0xff]  }
 0x183   : > { %v796_v55 = vadd.f32 %v795_v53, %v394_v43  ;;  %v797_v57 = vpop.f32.mrb[3].mxu0  ;;  %v839_v59 = vadd.f32 %v838_v56, %v402_v44  ;;  %v840_v61 = vpop.f32.mrb[3].mxu1 }
 0x184   : > { %v798_v60 = vadd.f32 %v797_v57, %v398_v47  ;;  %v841_v63 = vadd.f32 %v840_v61, %v406_v45 }
 0x185   : > { %v929_v62 = vpack.c.bf16 %v796_v55, %v792_v48  ;;  %v931_v1 = vpack.c.bf16 %v839_v59, %v835_v51 }
 0x186   : > { %v930_v2 = vpack.c.bf16 %v798_v60, %v794_v58  ;;  %v932_v4 = vpack.c.bf16 %v841_v63, %v837_v54  ;;  %v1855_v63 = vld [vmem:[%s2759_s4] ss:$0 sm:$0xff] }
 0x188   : > { %1488 = vmatprep.mubr.bf16.mxu0 %v930_v2  ;;  %1529 = vmatprep.mubr.bf16.mxu1 %v932_v4 }
 0x189   : > { %1489 = vmatmul.mubr.bf16.vlgmr.msra.gmra.mrb[8].mxu0 %v929_v62  ;;  %1530 = vmatmul.mubr.bf16.vlgmr.msra.gmra.mrb[8].mxu1 %v931_v1 }
 0x18a   : > { %1972 = vmatpush3.bf16.msra.mxu0 %v2150_v3  ;;  %1994 = vmatpush3.bf16.msra.mxu1 %v2151_v5 }
 0x18b   : > { %1973 = vmatprep.subr.bf16.mxu0 %v2152_v6  ;;  %1995 = vmatprep.subr.bf16.mxu1 %v2153_v8 }
 0x18e   : > { %1974 = vmatpush3.bf16.msra.mxu0 %v2154_v9  ;;  %1996 = vmatpush3.bf16.msra.mxu1 %v2155_v10 }
 0x18f   : > { %1975 = vmatprep.subr.bf16.mxu0 %v2156_v11  ;;  %1997 = vmatprep.subr.bf16.mxu1 %v2157_v12 }
 0x192   : > { %1976 = vmatpush3.bf16.msra.mxu0 %v2158_v13  ;;  %1998 = vmatpush3.bf16.msra.mxu1 %v2159_v14 }
 0x193   : > { %1977 = vmatprep.subr.bf16.mxu0 %v2160_v15  ;;  %1999 = vmatprep.subr.bf16.mxu1 %v2161_v16 }
 0x196   : > { %1978 = vmatpush3.bf16.msra.mxu0 %v2162_v17  ;;  %2000 = vmatpush3.bf16.msra.mxu1 %v2163_v18 }
 0x197   : > { %1979 = vmatprep.subr.bf16.mxu0 %v2164_v19  ;;  %2001 = vmatprep.subr.bf16.mxu1 %v2165_v20 }
 0x19a   : > { %1980 = vmatpush3.bf16.msra.mxu0 %v2166_v7  ;;  %2002 = vmatpush3.bf16.msra.mxu1 %v2167_v21 }
 0x19b   : > { %1981 = vmatprep.subr.bf16.mxu0 %v2168_v22  ;;  %2003 = vmatprep.subr.bf16.mxu1 %v2169_v23 }
 0x19e   : > { %1982 = vmatpush3.bf16.msra.mxu0 %v2170_v24  ;;  %2004 = vmatpush3.bf16.msra.mxu1 %v2171_v26 }
 0x19f   : > { %1983 = vmatprep.subr.bf16.mxu0 %v2172_v29  ;;  %2005 = vmatprep.subr.bf16.mxu1 %v2173_v31 }
 0x1a0   : > { %v877_v39 = vpop.f32.mrb[4].mxu0  ;;  %v920_v42 = vpop.f32.mrb[4].mxu1 }
 0x1a1   : > { %v879_v38 = vpop.f32.mrb[5].mxu0  ;;  %v921_v43 = vadd.f32 %v920_v42, %v418_v32  ;;  %v922_v44 = vpop.f32.mrb[5].mxu1  ;;  %v878_v47 = vadd.f32 %v877_v39, %v410_v34 }
 0x1a2   : > { %v881_v45 = vpop.f32.mrb[6].mxu0  ;;  %1984 = vmatpush3.bf16.msra.mxu0 %v2174_v33  ;;  %v923_v48 = vadd.f32 %v922_v44, %v422_v35  ;;  %v924_v50 = vpop.f32.mrb[6].mxu1  ;;  %2006 = vmatpush3.bf16.msra.mxu1 %v2175_v36  ;;  %v880_v53 = vadd.f32 %v879_v38, %v414_v0 }
 0x1a3   : > { %v882_v49 = vadd.f32 %v881_v45, %v410_v34  ;;  %v883_v51 = vpop.f32.mrb[7].mxu0  ;;  %1985 = vmatprep.subr.bf16.mxu0 %v2176_v37  ;;  %v925_v54 = vadd.f32 %v924_v50, %v418_v32  ;;  %v926_v55 = vpop.f32.mrb[7].mxu1  ;;  %2007 = vmatprep.subr.bf16.mxu1 %v2177_v41 }
 0x1a4   : > { %v884_v40 = vadd.f32 %v883_v51, %v414_v0  ;;  %v927_v57 = vadd.f32 %v926_v55, %v422_v35 }
 0x1a5   : > { %v933_v56 = vpack.c.bf16 %v882_v49, %v878_v47  ;;  %v935_v58 = vpack.c.bf16 %v925_v54, %v921_v43 }
 0x1a6   : > { %v934_v59 = vpack.c.bf16 %v884_v40, %v880_v53  ;;  %1986 = vmatpush3.bf16.msra.mxu0 %v2178_v46  ;;  %v936_v60 = vpack.c.bf16 %v927_v57, %v923_v48  ;;  %2008 = vmatpush3.bf16.msra.mxu1 %v2179_v52 }
 0x1a8   : > { %1570 = vmatprep.mubr.bf16.mxu0 %v934_v59  ;;  %1611 = vmatprep.mubr.bf16.mxu1 %v936_v60 }
 0x1a9   : > { %1571 = vmatmul.mubr.bf16.vlgmr.msra.gmra.mrb[12].mxu0 %v933_v56  ;;  %1612 = vmatmul.mubr.bf16.vlgmr.msra.gmra.mrb[12].mxu1 %v935_v58 }
 0x25c   : > { %v1943_v61 = vpop.f32.mrb[8].mxu0  ;;  %v1965_v62 = vpop.f32.mrb[8].mxu1 }
 0x25d   : > { %v1944_v1 = vpop.f32.mrb[9].mxu0  ;;  %v1966_v3 = vpop.f32.mrb[9].mxu1 }
 0x25e   : > { %v1945_v2 = vadd.f32 %v1944_v1, %v1943_v61  ;;  %v1946_v4 = vpop.f32.mrb[10].mxu0  ;;  %v1967_v5 = vadd.f32 %v1966_v3, %v1965_v62  ;;  %v1968_v6 = vpop.f32.mrb[10].mxu1 }
 0x25f   : > { %v1947_v8 = vpop.f32.mrb[11].mxu0  ;;  %v1969_v11 = vpop.f32.mrb[11].mxu1 }
 0x260   : > { %v1491_v9 = vadd.f32 %v1945_v2, %v1855_v63  ;;  %v1948_v10 = vadd.f32 %v1947_v8, %v1946_v4  ;;  %v1970_v12 = vadd.f32 %v1969_v11, %v1968_v6 }
 0x262   : > { %v1532_v13 = vadd.f32 %v1967_v5, %v1491_v9  ;;  %v1494_v14 = vadd.f32 %v1948_v10, %v1855_v63 }
 0x264   : > { %v1535_v15 = vadd.f32 %v1970_v12, %v1494_v14 }
 0x27c   : > { %v1987_v16 = vpop.f32.mrb[12].mxu0  ;;  %v2009_v17 = vpop.f32.mrb[12].mxu1 }
 0x27d   : > { %v1988_v18 = vpop.f32.mrb[13].mxu0  ;;  %v2010_v20 = vpop.f32.mrb[13].mxu1 }
 0x27e   : > { %v1989_v19 = vadd.f32 %v1988_v18, %v1987_v16  ;;  %v1990_v7 = vpop.f32.mrb[14].mxu0  ;;  %v2011_v21 = vadd.f32 %v2010_v20, %v2009_v17  ;;  %v2012_v22 = vpop.f32.mrb[14].mxu1 }
 0x27f   : > { %v1991_v23 = vpop.f32.mrb[15].mxu0  ;;  %v2013_v26 = vpop.f32.mrb[15].mxu1 }
 0x280   : > { %v1573_v24 = vadd.f32 %v1989_v19, %v1532_v13  ;;  %v1992_v25 = vadd.f32 %v1991_v23, %v1990_v7  ;;  %v2014_v27 = vadd.f32 %v2013_v26, %v2012_v22 }
 0x282   : > { %v1614_v28 = vadd.f32 %v2011_v21, %v1573_v24  ;;  %v1576_v29 = vadd.f32 %v1992_v25, %v1535_v15 }
 0x284   : > { %v1622_v30 = vmul.f32 0.70710677, %v1614_v28  ;;  %v1617_v31 = vadd.f32 %v2014_v27, %v1576_v29  ;;  %v1620_v34 = vmul.f32 0.5, %v1614_v28 }
 0x286   : > { %2180 = verf.f32 %v1622_v30  ;;  %v1623_v32 = vmul.f32 0.70710677, %v1617_v31  ;;  %v1621_v39 = vmul.f32 0.5, %v1617_v31 }
 0x288   : > { %2182 = verf.f32 %v1623_v32 }
 0x290   : > { %v2181_v33 = vpop.eup %2180 }
 0x291   : > { %v1626_v35 = vadd.f32 1.0, %v2181_v33 }
 0x292   : > { %v2183_v36 = vpop.eup %2182 }
 0x293   : > { %v1628_v37 = vmul.f32 %v1626_v35, %v1620_v34  ;;  %v1627_v0 = vadd.f32 1.0, %v2183_v36 }
 0x295   : > { %1630 = vst [vmem:[%s316_s10] sm:$0xff] %v1628_v37  ;;  %v1629_v41 = vmul.f32 %v1627_v0, %v1621_v39 }
 0x297   : > { %1631 = vst [vmem:[%s316_s10 + $0x8] sm:$0xff] %v1629_v41 }
 0x298   : > { %2311 = shalt.err (!%p2308_p0)
}
 0x299   : > { %s2312_s14 = scalar_lea.hbm %s2704_s7, 256  ;;  %s2316_s26 = scalar_lea.hbm %s2760_s5, 512 }
 0x29a   : > { %p2313_p4 = scmp.ne.s32.totalorder %s2704_s7, %s2312_s14  ;;  %p2317_p12 = scmp.lt.u32.totalorder %s2704_s7, %s2760_s5 }
 0x29b   : > { %p2318_p1 = scmp.lt.u32.totalorder %s2316_s26, %s2312_s14  ;;  %p2320_p13 = scmp.lt.u32.totalorder %s2312_s14, %s2704_s7 }
 0x29c   : > { %p2314_p2 = pnand %p2313_p4, %p2586_p10 }
 0x29d   : > { %p2319_p11 = por %p2318_p1, %p2317_p12 }
 0x29e   : > { %p2315_p8 = pneg %p2314_p2 }
 0x29f   : > { %p2321_p6 = por %p2320_p13, %p2319_p11 }
 0x2a1   : > { %p2322_p3 = pnand %p2321_p6, %p2315_p8 }
 0x2a3   : > { %2325 = shalt.err (!%p2322_p3)
}
 0x2a4   : > { %s2400_s10 = smov 128   ;;  %s2401_s27 = smov 8  }
 0x2a5   : > { %2029 = dma.vmem_to_hbm [thread:$0]  (%p2586_p10), %s2706_s24, 256, %s2704_s7, %s1633_s8, %s2400_s10, %s2400_s10, %s2401_s27  }
 0x2a6 PF: > { %s2782_s6 = sld [smem:[#allocation15_spill]]  ;;  %s2783_s9 = sld [smem:[#allocation16_spill]] }
 0x2a7   : > { %p2785_p7 = scmp.ge.s32.totalorder %s2388_s23, 2 }
 0x2ac   : > { %s1662_s25 = sand.u32 1, %s2782_s6   ;;  %p2784_p5 = scmp.ne.s32.totalorder %s2783_s9, 0 }
 0x2ad   : > { %s1663_s21 = scalar_lea.sflag [#allocation4], %s1662_s25 }
 0x2ae   : > { %p2046_p9 = pnand %p2785_p7, %p2784_p5 }
 0x2b0   : > { %2363 = dma.done.wait (!%p2046_p9), %s1663_s21, 256  }
 0x2b1   : > { %2365 = vsyncadd (!%p2046_p9), %s1663_s21, 4294967040  ;;  %s23_s23 = sadd.s32 1, %s2388_s23   ;;  %s2786_s18 = smov %s2372_s19 }
 0x2b2   : > { %p20_p0 = scmp.ge.s32.totalorder %s23_s23, 4   ;;  %s2787_s19 = smov %s2376_s20 }
 0x2b3   : > { %s2788_s20 = smov %s2598_s15  ;;  %s2789_s21 = smov %s2384_s22 }
 0x2b4   : > { %s2790_s22 = smov %s2792_s29  ;;  %22 = sbr.rel (!%p20_p0) target bundleno = 8 (0x8), region = 101 }
 0x2bb   :  { %1668 = vsyncpa [#allocation3], 1 }
 0x2bc   :  { %1670 = vsyncpa [#allocation3 + $0x1], 1 }
 0x2bd   :  { %1671 = vsyncpa [#allocation6], 1 }
 0x2be   :  { %1672 = vsyncpa [#allocation9], 1 }
 0x2bf   :  { %1673 = vsyncpa [#allocation4], 1 }
 0x2c0   :  { %1675 = vsyncpa [#allocation4 + $0x1], 1 }

</bundles_post_ra>
